<compile_context>
chip_gen: v6e
topology: v6e:2x2x1
jax: 0.10.0
libtpu: 0.0.40
codegen_flags: <defaults>
</compile_context>

<pallas_src>
import jax
import jax.numpy as jnp
from jax.experimental import pallas as pl
from jax.experimental.pallas import tpu as pltpu


def _chain_kernel_factory(n_layers):
    """Kernel applying `n_layers` per-row affine maps in sequence to a tile."""

    def kernel(x_ref, m_ref, b_ref, o_ref):
        x = x_ref[...].astype(jnp.float32)   # (bm, hw)
        m = m_ref[...]                       # (bm, n_layers) f32
        b = b_ref[...]                       # (bm, n_layers) f32
        # Static unroll over the chain; ordering / inversion already resolved
        # by the wrapper, so this is exactly "apply chain[i] for i in inds".
        for k in range(n_layers):
            x = x * m[:, k:k + 1] + b[:, k:k + 1]
        o_ref[...] = x.astype(o_ref.dtype)

    return kernel


def _sublane_min(dtype):
    itemsize = jnp.dtype(dtype).itemsize
    return max(8, 32 // max(itemsize, 1))    # 8 (f32), 16 (bf16), 32 (int8/fp8)


def sequential_flow(x, context, log_scale, shift, logpx=None, reverse=False,
                    inds=None, integration_times=None, block_rows=None):
    """Pallas equivalent of SequentialFlow.forward for a chain of conditional
    affine flow layers.

    x:          (N, C, H, W)
    context:    (N, C)      per-sample conditioning added to each layer's shift
    log_scale:  (K, C)      per-layer log-scales
    shift:      (K, C)      per-layer shifts
    logpx:      (N, 1) or None
    Returns y (or (y, logpx') when logpx is given), matching the module.
    """
    del integration_times  # TODO(synk): only meaningful for ODE-based layers.

    N, C, H, W = x.shape
    K = log_scale.shape[0]
    if inds is None:
        inds = list(range(K - 1, -1, -1)) if reverse else list(range(K))
    else:
        inds = list(inds)
    n_layers = len(inds)
    if n_layers == 0:
        return x if logpx is None else (x, logpx)

    rows, hw = N * C, H * W
    x2d = x.reshape(rows, hw)   # lane-dense slab; reshape only, no pad/concat.

    # Per-row (multiplier, bias) columns, one per chained layer, already in
    # application order and already inverted when reverse=True.
    cols_m, cols_b = [], []
    for i in inds:
        t_i = shift[i][None, :] + context                      # (N, C)
        if not reverse:
            m_i = jnp.broadcast_to(jnp.exp(log_scale[i])[None, :], (N, C))
            b_i = t_i
        else:
            m_i = jnp.broadcast_to(jnp.exp(-log_scale[i])[None, :], (N, C))
            b_i = -t_i * m_i
        cols_m.append(m_i.reshape(rows))
        cols_b.append(b_i.reshape(rows))
    m_rows = jnp.stack(cols_m, axis=1).astype(jnp.float32)     # (rows, L)
    b_rows = jnp.stack(cols_b, axis=1).astype(jnp.float32)     # (rows, L)

    # ---- Tiling -------------------------------------------------------------
    itemsize = jnp.dtype(x.dtype).itemsize
    smin = _sublane_min(x.dtype)
    if block_rows is None:
        target_bytes = 2 * 1024 * 1024   # ~2 MiB x-tile: safe on v5e's 16 MiB
                                         # scoped VMEM with double buffering.
        bm = (target_bytes // (hw * itemsize)) // smin * smin
        bm = max(smin, bm)
    else:
        bm = max(smin, (block_rows // smin) * smin)
    if rows <= bm:
        bm = rows                        # single full-extent block, grid=(1,)
    grid = (pl.cdiv(rows, bm),)          # partial last block masked by Pallas

    kernel = _chain_kernel_factory(n_layers)
    y2d = pl.pallas_call(
        kernel,
        out_shape=jax.ShapeDtypeStruct((rows, hw), x.dtype),
        grid_spec=pltpu.PrefetchScalarGridSpec(
            num_scalar_prefetch=0,
            grid=grid,
            in_specs=[
                pl.BlockSpec((bm, hw), lambda i: (i, 0)),
                pl.BlockSpec((bm, n_layers), lambda i: (i, 0)),
                pl.BlockSpec((bm, n_layers), lambda i: (i, 0)),
            ],
            out_specs=pl.BlockSpec((bm, hw), lambda i: (i, 0)),
        ),
        compiler_params=pltpu.CompilerParams(
            dimension_semantics=("parallel",)),
    )(x2d, m_rows, b_rows)

    y = y2d.reshape(N, C, H, W)

    if logpx is None:
        return y
    # log|det| of layer i per sample = H*W * sum_c log_scale[i, c]; the chain's
    # total is data-independent, so accumulate it with cheap scalar math.
    total_logdet = hw * sum(jnp.sum(log_scale[i]) for i in inds)
    logpx_out = (logpx + total_logdet) if reverse else (logpx - total_logdet)
    return y, logpx_out


def _ref_sequential_flow(x, context, log_scale, shift, logpx=None,
                         reverse=False, inds=None):
    """Pure-JAX reference (== the PyTorch SequentialFlow over these layers)."""
    K = log_scale.shape[0]
    if inds is None:
        inds = list(range(K - 1, -1, -1)) if reverse else list(range(K))
    hw = x.shape[2] * x.shape[3]
    for i in inds:
        scale = jnp.exp(log_scale[i])[None, :, None, None]
        bias = (shift[i][None, :] + context)[:, :, None, None]
        if not reverse:
            x = x * scale + bias
            if logpx is not None:
                logpx = logpx - hw * jnp.sum(log_scale[i])
        else:
            x = (x - bias) / scale
            if logpx is not None:
                logpx = logpx + hw * jnp.sum(log_scale[i])
    return x if logpx is None else (x, logpx)


if __name__ == "__main__":
    key = jax.random.PRNGKey(0)
    k1, k2, k3, k4 = jax.random.split(key, 4)

    N, C, H, W, K = 2, 4, 16, 16, 3
    x = jax.random.normal(k1, (N, C, H, W), dtype=jnp.float32)
    context = 0.1 * jax.random.normal(k2, (N, C), dtype=jnp.float32)
    log_scale = 0.05 * jax.random.normal(k3, (K, C), dtype=jnp.float32)
    shift = 0.1 * jax.random.normal(k4, (K, C), dtype=jnp.float32)
    logpx0 = jnp.zeros((N, 1), dtype=jnp.float32)

    # Forward: (x, logpx) -> (y, logpy)
    y, logpy = sequential_flow(x, context, log_scale, shift, logpx=logpx0)
    y = jax.block_until_ready(y)
    y_ref, logpy_ref = _ref_sequential_flow(x, context, log_scale, shift,
                                            logpx=logpx0)
    assert y.shape == x.shape and y.dtype == x.dtype
    assert jnp.allclose(y, y_ref, atol=1e-5, rtol=1e-5)
    assert jnp.allclose(logpy, logpy_ref, atol=1e-5, rtol=1e-5)

    # logpx=None path returns x only (as the module does).
    y_only = sequential_flow(x, context, log_scale, shift)
    assert jnp.allclose(y_only, y_ref, atol=1e-5, rtol=1e-5)

    # Reverse pass inverts the chain and the logdet accumulation.
    x_rec, logpx_rec = sequential_flow(y, context, log_scale, shift,
                                       logpx=logpy, reverse=True)
    assert jnp.allclose(x_rec, x, atol=1e-4, rtol=1e-4)
    assert jnp.allclose(logpx_rec, logpx0, atol=1e-4, rtol=1e-4)

    # Explicit inds subset is honored.
    y_sub = sequential_flow(x, context, log_scale, shift, inds=[0, 2])
    y_sub_ref = _ref_sequential_flow(x, context, log_scale, shift, inds=[0, 2])
    assert jnp.allclose(y_sub, y_sub_ref, atol=1e-5, rtol=1e-5)

    print("KERNEL_OK")
</pallas_src>

<mosaic_0001>
module attributes {stable_mosaic.version = 11 : i64} {
  func.func @kernel(%arg0: i32, %arg1: memref<8x256xf32, #tpu.memory_space<vmem>>, %arg2: memref<8x3xf32, #tpu.memory_space<vmem>>, %arg3: memref<8x3xf32, #tpu.memory_space<vmem>>, %arg4: memref<8x256xf32, #tpu.memory_space<vmem>>) attributes {dimension_semantics = [#tpu.dimension_semantics<parallel>], iteration_bounds = array<i64: 1>, scalar_prefetch = 0 : i64, scratch_operands = 0 : i64, tpu.core_type = #tpu.core_type<tc>, window_params = [{transform_indices = @transform_0, window_bounds = array<i64: 8, 256>}, {transform_indices = @transform_1, window_bounds = array<i64: 8, 3>}, {transform_indices = @transform_2, window_bounds = array<i64: 8, 3>}, {transform_indices = @transform_3, window_bounds = array<i64: 8, 256>}]} {
    %c0 = arith.constant 0 : index
    %c0_0 = arith.constant 0 : index
    %0 = vector.load %arg1[%c0, %c0_0] : memref<8x256xf32, #tpu.memory_space<vmem>>, vector<8x256xf32>
    %c0_1 = arith.constant 0 : index
    %c0_2 = arith.constant 0 : index
    %1 = vector.load %arg2[%c0_1, %c0_2] : memref<8x3xf32, #tpu.memory_space<vmem>>, vector<8x3xf32>
    %c0_3 = arith.constant 0 : index
    %c0_4 = arith.constant 0 : index
    %2 = vector.load %arg3[%c0_3, %c0_4] : memref<8x3xf32, #tpu.memory_space<vmem>>, vector<8x3xf32>
    %3 = vector.extract_strided_slice %1 {offsets = [0, 0], sizes = [8, 1], strides = [1, 1]} : vector<8x3xf32> to vector<8x1xf32>
    %4 = vector.broadcast %3 : vector<8x1xf32> to vector<8x256xf32>
    %5 = arith.mulf %0, %4 : vector<8x256xf32>
    %6 = vector.extract_strided_slice %2 {offsets = [0, 0], sizes = [8, 1], strides = [1, 1]} : vector<8x3xf32> to vector<8x1xf32>
    %7 = vector.broadcast %6 : vector<8x1xf32> to vector<8x256xf32>
    %8 = arith.addf %5, %7 : vector<8x256xf32>
    %9 = vector.extract_strided_slice %1 {offsets = [0, 1], sizes = [8, 1], strides = [1, 1]} : vector<8x3xf32> to vector<8x1xf32>
    %10 = vector.broadcast %9 : vector<8x1xf32> to vector<8x256xf32>
    %11 = arith.mulf %8, %10 : vector<8x256xf32>
    %12 = vector.extract_strided_slice %2 {offsets = [0, 1], sizes = [8, 1], strides = [1, 1]} : vector<8x3xf32> to vector<8x1xf32>
    %13 = vector.broadcast %12 : vector<8x1xf32> to vector<8x256xf32>
    %14 = arith.addf %11, %13 : vector<8x256xf32>
    %15 = vector.extract_strided_slice %1 {offsets = [0, 2], sizes = [8, 1], strides = [1, 1]} : vector<8x3xf32> to vector<8x1xf32>
    %16 = vector.broadcast %15 : vector<8x1xf32> to vector<8x256xf32>
    %17 = arith.mulf %14, %16 : vector<8x256xf32>
    %18 = vector.extract_strided_slice %2 {offsets = [0, 2], sizes = [8, 1], strides = [1, 1]} : vector<8x3xf32> to vector<8x1xf32>
    %19 = vector.broadcast %18 : vector<8x1xf32> to vector<8x256xf32>
    %20 = arith.addf %17, %19 : vector<8x256xf32>
    %c0_5 = arith.constant 0 : index
    %c0_6 = arith.constant 0 : index
    %21 = vector.load %arg4[%c0_5, %c0_6] : memref<8x256xf32, #tpu.memory_space<vmem>>, vector<8x256xf32>
    tpu.vector_store %arg4[%c0_5, %c0_6], %20 {strides = array<i32>} : memref<8x256xf32, #tpu.memory_space<vmem>>, vector<8x256xf32>,
    return
  }
  func.func @transform_0(%arg0: i32) -> (i32, i32) {
    %c0_i32 = arith.constant 0 : i32
    %c0_i32_0 = arith.constant 0 : i32
    return %arg0, %c0_i32 : i32, i32
  }
  func.func @transform_1(%arg0: i32) -> (i32, i32) {
    %c0_i32 = arith.constant 0 : i32
    %c0_i32_0 = arith.constant 0 : i32
    return %arg0, %c0_i32 : i32, i32
  }
  func.func @transform_2(%arg0: i32) -> (i32, i32) {
    %c0_i32 = arith.constant 0 : i32
    %c0_i32_0 = arith.constant 0 : i32
    return %arg0, %c0_i32 : i32, i32
  }
  func.func @transform_3(%arg0: i32) -> (i32, i32) {
    %c0_i32 = arith.constant 0 : i32
    %c0_i32_0 = arith.constant 0 : i32
    return %arg0, %c0_i32 : i32, i32
  }
}

</mosaic_0001>

<bundles_post_ra>
// kernel: tpu_custom_call.1
= control target key start
LH: loop header
LB: loop body
LE: loop exit
PB: predicated region body
PF: predicated region fallthrough
CT: control target
= control target key end

     0   :  { %v103_v1 = vmov 1   ;;  %v104_v2 = vmov 0   ;;  %s142_s0 = inlined_call_operand.vmem [shape: f32[8,256], index: 0, kind: input, shape index: {}]   ;;  %s143_s1 = inlined_call_operand.vmem [shape: f32[8,3], index: 1, kind: input, shape index: {}]   ;;  %s144_s2 = inlined_call_operand.vmem [shape: f32[8,3], index: 2, kind: input, shape index: {}]   ;;  %s145_s3 = inlined_call_operand.hbm [shape: f32[8,256], index: 3, kind: output, shape index: {}]  }
   0x1   :  { %v17_v0 = vld [vmem:[%s143_s1] sm:$0xff]  ;;  %78 = vset.pattern.permute.xlu1 %v103_v1  ;;  %77 = vset.pattern.permute.xlu0 %v104_v2 }
   0x2   :  { %8 = vsyncpa [#allocation3], 0  ;;  %34 = vperm.xlu1 %78, %v17_v0   ;;  %21 = vperm.xlu0 %77, %v17_v0   ;;  %v18_v3 = vld [vmem:[%s144_s2] sm:$0xff]  ;;  %v105_v4 = vmov 2   ;;  %v16_v8 = vld [vmem:[%s142_s0 + $0x8] sm:$0xff]  ;;  %s106_s2 = smov [#allocation2]  }
   0x3   :  { %v15_v7 = vld [vmem:[%s142_s0] sm:$0xff]  ;;  %s65_s19 = sshll.u32 %s106_s2, 4  ;;  %s66_s19 = int_to_ptr.vmem [resolvable:$true] %s65_s19 }
   0x4   :  { %s81_s0 = scalar_lea.vmem %s66_s19, 256  ;;  %p86_p1 = scmp.lt.s32.totalorder %s66_s19, %s66_s19 }
   0x5   :  { %p82_p0 = scmp.ne.s32.totalorder %s66_s19, %s81_s0  ;;  %p87_p2 = scmp.lt.s32.totalorder %s81_s0, %s81_s0 }
   0x6   :  { %40 = vperm.xlu1 %78, %v18_v3   ;;  %28 = vperm.xlu0 %77, %v18_v3  }
   0x7   :  { %p88_p3 = por %p87_p2, %p86_p1 }
   0x9   :  { %p89_p4 = pnand %p88_p3, %p82_p0 }
   0xa   :  { %79 = vset.pattern.permute.xlu0 %v105_v4  ;;  %80 = vset.pattern.permute.xlu1 %v105_v4 }
   0xb   :  { %46 = vperm.xlu0 %79, %v17_v0   ;;  %52 = vperm.xlu1 %80, %v18_v3  }
  0x7d   :  { %v35_v5 = vpop.permute.xlu1 %34  ;;  %v22_v6 = vpop.permute.xlu0 %21 }
  0x7e   :  { %v24_v9 = vmul.f32 %v22_v6, %v15_v7  ;;  %v25_v10 = vmul.f32 %v22_v6, %v16_v8 }
  0x81   :  { %v29_v11 = vpop.permute.xlu0 %28  ;;  %v41_v14 = vpop.permute.xlu1 %40 }
  0x82   :  { %v31_v12 = vadd.f32 %v29_v11, %v24_v9  ;;  %v32_v13 = vadd.f32 %v29_v11, %v25_v10 }
  0x84   :  { %v37_v15 = vmul.f32 %v35_v5, %v31_v12  ;;  %v38_v16 = vmul.f32 %v35_v5, %v32_v13 }
  0x86   :  { %v47_v17 = vpop.permute.xlu0 %46  ;;  %v43_v18 = vadd.f32 %v41_v14, %v37_v15  ;;  %v44_v19 = vadd.f32 %v41_v14, %v38_v16  ;;  %v53_v20 = vpop.permute.xlu1 %52 }
  0x88   :  { %v49_v21 = vmul.f32 %v47_v17, %v43_v18  ;;  %v50_v22 = vmul.f32 %v47_v17, %v44_v19 }
  0x8a   :  { %v55_v23 = vadd.f32 %v53_v20, %v49_v21  ;;  %v56_v24 = vadd.f32 %v53_v20, %v50_v22 }
  0x8c   :  { %57 = vst [vmem:[#allocation2] sm:$0xff] %v55_v23  ;;  %58 = vst [vmem:[#allocation2 + $0x8] sm:$0xff] %v56_v24 }
  0x8d   :  { %92 = shalt.err (!%p89_p4)
}
  0x8e   :  { %68 = dma.vmem_to_hbm [thread:$0]  %s66_s19, 256, %s145_s3, [#allocation3]  }
  0x8f   :  { %101 = dma.done.wait [#allocation3], 256  }
  0x90   :  { %102 = vsyncadd [#allocation3], 4294967040 }
  0x91   :  { %72 = vsyncpa [#allocation3], 1 }

</bundles_post_ra>
